<compile_context>
chip_gen: v7x
topology: tpu7x:2x2x1
jax: 0.10.0
libtpu: 0.0.40
codegen_flags: <defaults>
</compile_context>

<pallas_src>
import functools

import jax
import jax.numpy as jnp
from jax.experimental import pallas as pl
from jax.experimental.pallas import tpu as pltpu


def _round_up(v, m):
    return ((v + m - 1) // m) * m


def _itemsize(dt):
    return jnp.finfo(dt).bits // 8


def decoder_kernel(x_ref, w1_ref, b1_ref, wm_ref, bm_ref, wv_ref, bv_ref,
                   pm_ref, pv_ref, h_ref):
    """Grid = (batch tile i  [parallel], output-column tile j  [arbitrary])."""
    # Hidden activation: computed once per batch tile (j == 0), cached in VMEM
    # scratch, reused for every output-column tile of both heads.
    @pl.when(pl.program_id(1) == 0)
    def _():
        h = jnp.dot(x_ref[...], w1_ref[...], preferred_element_type=jnp.float32)
        h = jnp.maximum(h + b1_ref[...], 0.0)          # BN + bias folded into W1'/b1'
        h_ref[...] = h.astype(h_ref.dtype)             # (intentional cast for bf16 path)

    h = h_ref[...]
    # Two lane-dense head matmuls over the current column tile; f32 accumulation,
    # f32 bias/exp epilogue. exp only touches the variance head (single EUP slot).
    ym = jnp.dot(h, wm_ref[...], preferred_element_type=jnp.float32) + bm_ref[...]
    yv = jnp.dot(h, wv_ref[...], preferred_element_type=jnp.float32) + bv_ref[...]
    pm_ref[...] = ym.astype(pm_ref.dtype)
    pv_ref[...] = jnp.exp(yv).astype(pv_ref.dtype)


@functools.partial(
    jax.jit,
    static_argnames=("block_b", "block_n", "compute_dtype", "out_dtype"))
def decoder_forward(x, params, *, block_b=512, block_n=2048,
                    compute_dtype=jnp.bfloat16, out_dtype=jnp.float32):
    """Fused Decoder forward. x: (B, n_input) f32. Returns (p_m, p_v)."""
    (w1, b1, bn_gamma, bn_beta, bn_mean, bn_var, wm, bm, wv, bv) = params
    B, n_in = x.shape
    n_hidden = w1.shape[1]
    n_out = wm.shape[1]

    # ---- wrapper-side algebra (cheap glue, fused by XLA around the call) -----------
    # Fold eval-mode BatchNorm1d (eps=1e-3) + b1 into first-layer weight/bias:
    #   BN(x@W1 + b1) = x @ (W1*scale) + (b1*scale + shift)
    eps = 1e-3
    inv_std = 1.0 / jnp.sqrt(bn_var + eps)
    scale = bn_gamma * inv_std                        # (n_hidden,)
    shift = bn_beta - bn_mean * scale                 # (n_hidden,)
    w1f = (w1 * scale[None, :]).astype(compute_dtype)                 # (n_in, n_hidden)
    b1f = (b1 * scale + shift).reshape(1, n_hidden).astype(jnp.float32)

    xk = x.astype(compute_dtype)
    wmk = wm.astype(compute_dtype)
    wvk = wv.astype(compute_dtype)
    bm2 = bm.reshape(1, n_out).astype(jnp.float32)
    bv2 = bv.reshape(1, n_out).astype(jnp.float32)

    # ---- tiling ---------------------------------------------------------------------
    # Batch tile: multiple of 16 rows (bf16 sublane quantum; also valid for f32).
    tb = min(_round_up(block_b, 16), _round_up(B, 16))
    # Keep >=2 batch tiles when the batch is big enough so the "parallel" axis can
    # span both TensorCores on megacore parts (v7x).
    if B >= 32 and pl.cdiv(B, tb) < 2:
        tb = max(16, _round_up(pl.cdiv(B, 2), 16))
    grid_b = pl.cdiv(B, tb)        # ragged last block -> masked writeback (no jnp.pad)

    # Output-column tile: multiple of 128 lanes, or the full n_out when it is smaller.
    tn = n_out if n_out <= block_n else _round_up(block_n, 128)
    grid_n = pl.cdiv(n_out, tn)

    in_b = _itemsize(compute_dtype)
    out_b = _itemsize(out_dtype)
    cost = pl.CostEstimate(
        flops=2 * B * n_in * n_hidden + 4 * B * n_hidden * n_out,
        transcendentals=B * n_out,
        bytes_accessed=(B * n_in + n_in * n_hidden + 2 * n_hidden * n_out) * in_b
        + (n_hidden + 2 * n_out) * 4
        + 2 * B * n_out * out_b,
    )

    p_m, p_v = pl.pallas_call(
        decoder_kernel,
        grid=(grid_b, grid_n),
        in_specs=[
            pl.BlockSpec((tb, n_in), lambda i, j: (i, 0)),         # x tile (pipelined)
            pl.BlockSpec((n_in, n_hidden), lambda i, j: (0, 0)),   # W1' (grid-invariant, tiny)
            pl.BlockSpec((1, n_hidden), lambda i, j: (0, 0)),      # b1'
            pl.BlockSpec((n_hidden, tn), lambda i, j: (0, j)),     # Wm column tile
            pl.BlockSpec((1, tn), lambda i, j: (0, j)),            # bm tile
            pl.BlockSpec((n_hidden, tn), lambda i, j: (0, j)),     # Wv column tile
            pl.BlockSpec((1, tn), lambda i, j: (0, j)),            # bv tile
        ],
        out_specs=[
            pl.BlockSpec((tb, tn), lambda i, j: (i, j)),           # p_m tile
            pl.BlockSpec((tb, tn), lambda i, j: (i, j)),           # p_v tile
        ],
        out_shape=[
            jax.ShapeDtypeStruct((B, n_out), out_dtype),
            jax.ShapeDtypeStruct((B, n_out), out_dtype),
        ],
        scratch_shapes=[pltpu.VMEM((tb, n_hidden), compute_dtype)],  # h cache
        compiler_params=pltpu.CompilerParams(
            dimension_semantics=("parallel", "arbitrary"),
            vmem_limit_bytes=64 * 1024 * 1024,
        ),
        cost_estimate=cost,
    )(xk, w1f, b1f, wmk, bm2, wvk, bv2)
    return p_m, p_v


def init_params(key, n_input, n_hidden, n_output):
    ks = jax.random.split(key, 10)
    w1 = jax.random.normal(ks[0], (n_input, n_hidden), jnp.float32) * 0.05
    b1 = jax.random.normal(ks[1], (n_hidden,), jnp.float32) * 0.01
    bn_gamma = 1.0 + 0.1 * jax.random.normal(ks[2], (n_hidden,), jnp.float32)
    bn_beta = 0.1 * jax.random.normal(ks[3], (n_hidden,), jnp.float32)
    bn_mean = 0.05 * jax.random.normal(ks[4], (n_hidden,), jnp.float32)
    bn_var = 1.0 + 0.1 * jnp.abs(jax.random.normal(ks[5], (n_hidden,), jnp.float32))
    wm = jax.random.normal(ks[6], (n_hidden, n_output), jnp.float32) * 0.05
    bm = jax.random.normal(ks[7], (n_output,), jnp.float32) * 0.01
    wv = jax.random.normal(ks[8], (n_hidden, n_output), jnp.float32) * 0.05
    bv = jax.random.normal(ks[9], (n_output,), jnp.float32) * 0.01
    return (w1, b1, bn_gamma, bn_beta, bn_mean, bn_var, wm, bm, wv, bv)


def decoder_ref(x, params):
    (w1, b1, bn_gamma, bn_beta, bn_mean, bn_var, wm, bm, wv, bv) = params
    eps = 1e-3
    h = x @ w1 + b1
    h = (h - bn_mean) / jnp.sqrt(bn_var + eps) * bn_gamma + bn_beta
    h = jnp.maximum(h, 0.0)
    return h @ wm + bm, jnp.exp(h @ wv + bv)


if __name__ == "__main__":
    key = jax.random.PRNGKey(0)
    k_p, k_x, k_p2, k_x2 = jax.random.split(key, 4)

    # --- small config consistent with the module (n_hidden=128 default) -------------
    B, n_input, n_hidden, n_output = 8, 32, 128, 64
    x = jax.random.normal(k_x, (B, n_input), jnp.float32)
    params = init_params(k_p, n_input, n_hidden, n_output)
    rm, rv = decoder_ref(x, params)

    # f32 compute path: tight tolerance.
    p_m, p_v = decoder_forward(x, params, compute_dtype=jnp.float32)
    jax.block_until_ready((p_m, p_v))
    assert jnp.allclose(p_m, rm, atol=1e-4, rtol=1e-4)
    assert jnp.allclose(p_v, rv, atol=1e-4, rtol=1e-4)

    # default bf16 MXU path (f32 accumulation): loose tolerance.
    p_mb, p_vb = decoder_forward(x, params)
    jax.block_until_ready((p_mb, p_vb))
    assert jnp.allclose(p_mb, rm, atol=5e-2, rtol=5e-2)
    assert jnp.allclose(p_vb, rv, atol=5e-2, rtol=5e-2)

    # --- multi-tile path: ragged batch (300 -> 3 tiles of 128) and N-tiled heads
    #     (n_out=384 with block_n=128 -> 3 column tiles, h reused from scratch) ------
    B2, n_out2 = 300, 384
    params2 = init_params(k_p2, n_input, n_hidden, n_out2)
    x2 = jax.random.normal(k_x2, (B2, n_input), jnp.float32)
    rm2, rv2 = decoder_ref(x2, params2)

    p_m2, p_v2 = decoder_forward(x2, params2, block_b=128, block_n=128,
                                 compute_dtype=jnp.float32)
    jax.block_until_ready((p_m2, p_v2))
    assert jnp.allclose(p_m2, rm2, atol=1e-4, rtol=1e-4)
    assert jnp.allclose(p_v2, rv2, atol=1e-4, rtol=1e-4)

    # bf16 compute + bf16 output dtype (halves output DMA bytes); loose tolerance.
    p_m3, p_v3 = decoder_forward(x2, params2, block_b=128, block_n=128,
                                 out_dtype=jnp.bfloat16)
    jax.block_until_ready((p_m3, p_v3))
    assert p_m3.dtype == jnp.bfloat16 and p_v3.dtype == jnp.bfloat16
    assert jnp.allclose(p_m3.astype(jnp.float32), rm2, atol=1e-1, rtol=1e-1)
    assert jnp.allclose(p_v3.astype(jnp.float32), rv2, atol=1e-1, rtol=1e-1)

    print("KERNEL_OK")
</pallas_src>

<mosaic_0001>
module attributes {stable_mosaic.version = 11 : i64} {
  func.func @decoder_kernel(%arg0: i32, %arg1: i32, %arg2: memref<16x32xf32, #tpu.memory_space<vmem>>, %arg3: memref<32x128xf32, #tpu.memory_space<vmem>>, %arg4: memref<1x128xf32, #tpu.memory_space<vmem>>, %arg5: memref<128x64xf32, #tpu.memory_space<vmem>>, %arg6: memref<1x64xf32, #tpu.memory_space<vmem>>, %arg7: memref<128x64xf32, #tpu.memory_space<vmem>>, %arg8: memref<1x64xf32, #tpu.memory_space<vmem>>, %arg9: memref<16x64xf32, #tpu.memory_space<vmem>>, %arg10: memref<16x64xf32, #tpu.memory_space<vmem>>, %arg11: memref<16x128xf32, #tpu.memory_space<vmem>>) attributes {dimension_semantics = [#tpu.dimension_semantics<parallel>, #tpu.dimension_semantics<arbitrary>], iteration_bounds = array<i64: 1, 1>, scalar_prefetch = 0 : i64, scratch_operands = 1 : i64, tpu.core_type = #tpu.core_type<tc>, window_params = [{transform_indices = @transform_0, window_bounds = array<i64: 16, 32>}, {pipeline_mode = #tpu.pipeline_mode<synchronous>, transform_indices = @transform_1, window_bounds = array<i64: 32, 128>}, {pipeline_mode = #tpu.pipeline_mode<synchronous>, transform_indices = @transform_2, window_bounds = array<i64: 1, 128>}, {transform_indices = @transform_3, window_bounds = array<i64: 128, 64>}, {transform_indices = @transform_4, window_bounds = array<i64: 1, 64>}, {transform_indices = @transform_5, window_bounds = array<i64: 128, 64>}, {transform_indices = @transform_6, window_bounds = array<i64: 1, 64>}, {transform_indices = @transform_7, window_bounds = array<i64: 16, 64>}, {transform_indices = @transform_8, window_bounds = array<i64: 16, 64>}]} {
    %c0_i32 = arith.constant 0 : i32
    %0 = arith.cmpi eq, %arg1, %c0_i32 : i32
    %1 = arith.extui %0 : i1 to i32
    %c0_i32_0 = arith.constant 0 : i32
    %2 = arith.cmpi ne, %1, %c0_i32_0 : i32
    scf.if %2 {
      %c0_15 = arith.constant 0 : index
      %c0_16 = arith.constant 0 : index
      %17 = vector.load %arg2[%c0_15, %c0_16] : memref<16x32xf32, #tpu.memory_space<vmem>>, vector<16x32xf32>
      %c0_17 = arith.constant 0 : index
      %c0_18 = arith.constant 0 : index
      %18 = vector.load %arg3[%c0_17, %c0_18] : memref<32x128xf32, #tpu.memory_space<vmem>>, vector<32x128xf32>
      %cst_19 = arith.constant dense<0.000000e+00> : vector<16x128xf32>
      %19 = tpu.matmul %17, %18, %cst_19 {dimension_numbers = #tpu.dot_dimension_numbers<[1], [0], [0], [1], [0, 0, 1, 1], [], []>} : vector<16x32xf32>, vector<32x128xf32>, vector<16x128xf32> -> vector<16x128xf32>
      %c0_20 = arith.constant 0 : index
      %c0_21 = arith.constant 0 : index
      %20 = vector.load %arg4[%c0_20, %c0_21] : memref<1x128xf32, #tpu.memory_space<vmem>>, vector<1x128xf32>
      %21 = vector.broadcast %20 : vector<1x128xf32> to vector<16x128xf32>
      %22 = arith.addf %19, %21 : vector<16x128xf32>
      %cst_22 = arith.constant 0.000000e+00 : f32
      %23 = vector.broadcast %cst_22 : f32 to vector<16x128xf32>
      %24 = arith.maximumf %22, %23 : vector<16x128xf32>
      %c0_23 = arith.constant 0 : index
      %c0_24 = arith.constant 0 : index
      %25 = vector.load %arg11[%c0_23, %c0_24] : memref<16x128xf32, #tpu.memory_space<vmem>>, vector<16x128xf32>
      tpu.vector_store %arg11[%c0_23, %c0_24], %24 {strides = array<i32>} : memref<16x128xf32, #tpu.memory_space<vmem>>, vector<16x128xf32>,
    } else {
    }
    %c0 = arith.constant 0 : index
    %c0_1 = arith.constant 0 : index
    %3 = vector.load %arg11[%c0, %c0_1] : memref<16x128xf32, #tpu.memory_space<vmem>>, vector<16x128xf32>
    %c0_2 = arith.constant 0 : index
    %c0_3 = arith.constant 0 : index
    %4 = vector.load %arg5[%c0_2, %c0_3] : memref<128x64xf32, #tpu.memory_space<vmem>>, vector<128x64xf32>
    %cst = arith.constant dense<0.000000e+00> : vector<16x64xf32>
    %5 = tpu.matmul %3, %4, %cst {dimension_numbers = #tpu.dot_dimension_numbers<[1], [0], [0], [1], [0, 0, 1, 1], [], []>} : vector<16x128xf32>, vector<128x64xf32>, vector<16x64xf32> -> vector<16x64xf32>
    %c0_4 = arith.constant 0 : index
    %c0_5 = arith.constant 0 : index
    %6 = vector.load %arg6[%c0_4, %c0_5] : memref<1x64xf32, #tpu.memory_space<vmem>>, vector<1x64xf32>
    %7 = vector.broadcast %6 : vector<1x64xf32> to vector<16x64xf32>
    %8 = arith.addf %5, %7 : vector<16x64xf32>
    %c0_6 = arith.constant 0 : index
    %c0_7 = arith.constant 0 : index
    %9 = vector.load %arg7[%c0_6, %c0_7] : memref<128x64xf32, #tpu.memory_space<vmem>>, vector<128x64xf32>
    %cst_8 = arith.constant dense<0.000000e+00> : vector<16x64xf32>
    %10 = tpu.matmul %3, %9, %cst_8 {dimension_numbers = #tpu.dot_dimension_numbers<[1], [0], [0], [1], [0, 0, 1, 1], [], []>} : vector<16x128xf32>, vector<128x64xf32>, vector<16x64xf32> -> vector<16x64xf32>
    %c0_9 = arith.constant 0 : index
    %c0_10 = arith.constant 0 : index
    %11 = vector.load %arg8[%c0_9, %c0_10] : memref<1x64xf32, #tpu.memory_space<vmem>>, vector<1x64xf32>
    %12 = vector.broadcast %11 : vector<1x64xf32> to vector<16x64xf32>
    %13 = arith.addf %10, %12 : vector<16x64xf32>
    %c0_11 = arith.constant 0 : index
    %c0_12 = arith.constant 0 : index
    %14 = vector.load %arg9[%c0_11, %c0_12] : memref<16x64xf32, #tpu.memory_space<vmem>>, vector<16x64xf32>
    tpu.vector_store %arg9[%c0_11, %c0_12], %8 {strides = array<i32>} : memref<16x64xf32, #tpu.memory_space<vmem>>, vector<16x64xf32>,
    %15 = math.exp %13 : vector<16x64xf32>
    %c0_13 = arith.constant 0 : index
    %c0_14 = arith.constant 0 : index
    %16 = vector.load %arg10[%c0_13, %c0_14] : memref<16x64xf32, #tpu.memory_space<vmem>>, vector<16x64xf32>
    tpu.vector_store %arg10[%c0_13, %c0_14], %15 {strides = array<i32>} : memref<16x64xf32, #tpu.memory_space<vmem>>, vector<16x64xf32>,
    return
  }
  func.func @transform_0(%arg0: i32, %arg1: i32) -> (i32, i32) {
    %c0_i32 = arith.constant 0 : i32
    %c0_i32_0 = arith.constant 0 : i32
    return %arg0, %c0_i32 : i32, i32
  }
  func.func @transform_1(%arg0: i32, %arg1: i32) -> (i32, i32) {
    %c0_i32 = arith.constant 0 : i32
    %c0_i32_0 = arith.constant 0 : i32
    %c0_i32_1 = arith.constant 0 : i32
    return %c0_i32, %c0_i32_0 : i32, i32
  }
  func.func @transform_2(%arg0: i32, %arg1: i32) -> (i32, i32) {
    %c0_i32 = arith.constant 0 : i32
    %c0_i32_0 = arith.constant 0 : i32
    %c0_i32_1 = arith.constant 0 : i32
    return %c0_i32, %c0_i32_0 : i32, i32
  }
  func.func @transform_3(%arg0: i32, %arg1: i32) -> (i32, i32) {
    %c0_i32 = arith.constant 0 : i32
    %c0_i32_0 = arith.constant 0 : i32
    return %c0_i32, %arg1 : i32, i32
  }
  func.func @transform_4(%arg0: i32, %arg1: i32) -> (i32, i32) {
    %c0_i32 = arith.constant 0 : i32
    %c0_i32_0 = arith.constant 0 : i32
    return %c0_i32, %arg1 : i32, i32
  }
  func.func @transform_5(%arg0: i32, %arg1: i32) -> (i32, i32) {
    %c0_i32 = arith.constant 0 : i32
    %c0_i32_0 = arith.constant 0 : i32
    return %c0_i32, %arg1 : i32, i32
  }
  func.func @transform_6(%arg0: i32, %arg1: i32) -> (i32, i32) {
    %c0_i32 = arith.constant 0 : i32
    %c0_i32_0 = arith.constant 0 : i32
    return %c0_i32, %arg1 : i32, i32
  }
  func.func @transform_7(%arg0: i32, %arg1: i32) -> (i32, i32) {
    %c0_i32 = arith.constant 0 : i32
    return %arg0, %arg1 : i32, i32
  }
  func.func @transform_8(%arg0: i32, %arg1: i32) -> (i32, i32) {
    %c0_i32 = arith.constant 0 : i32
    return %arg0, %arg1 : i32, i32
  }
}

</mosaic_0001>

<bundles_post_ra>
// kernel: decoder_forward.1
= control target key start
LH: loop header
LB: loop body
LE: loop exit
PB: predicated region body
PF: predicated region fallthrough
CT: control target
= control target key end

     0   :  { %14 = vsyncpa [#allocation4], 0  ;;  %s1093_s0 = inlined_call_operand.hbm [shape: f32[8,32], index: 0, kind: input, shape index: {}]   ;;  %s1094_s1 = inlined_call_operand.hbm [shape: f32[32,128], index: 1, kind: input, shape index: {}]   ;;  %s1095_s2 = inlined_call_operand.hbm [shape: f32[1,128], index: 2, kind: input, shape index: {}]   ;;  %s1096_s3 = inlined_call_operand.hbm [shape: f32[128,64], index: 3, kind: input, shape index: {}]   ;;  %s1097_s4 = inlined_call_operand.hbm [shape: f32[1,64], index: 4, kind: input, shape index: {}]   ;;  %s1098_s5 = inlined_call_operand.hbm [shape: f32[128,64], index: 5, kind: input, shape index: {}]   ;;  %s1099_s6 = inlined_call_operand.hbm [shape: f32[1,64], index: 6, kind: input, shape index: {}]   ;;  %s1100_s7 = inlined_call_operand.hbm [shape: f32[8,64], index: 7, kind: output, shape index: {0}]   ;;  %s1101_s8 = inlined_call_operand.hbm [shape: f32[8,64], index: 8, kind: output, shape index: {1}]  }
   0x1   :  { %15 = vsyncpa [#allocation7], 0 }
   0x2   :  { %16 = vsyncpa [#allocation10], 0 }
   0x3   :  { %17 = vsyncpa [#allocation13], 0 }
   0x4   :  { %18 = vsyncpa [#allocation5], 0 }
   0x5   :  { %19 = vsyncpa [#allocation17], 0 }
   0x6   :  { %24 = vsyncadd [#allocation4], 128  ;;  %s890_s27 = smov [#allocation6]   ;;  %s891_s29 = smov [#allocation9]  }
   0x7   :  { %s37_s28 = sshll.u32 %s890_s27, 4  ;;  %s59_s30 = sshll.u32 %s891_s29, 4  ;;  %s38_s28 = int_to_ptr.vmem [resolvable:$true] %s37_s28  ;;  %s946_s30 = int_to_ptr.vmem [resolvable:$true] %s59_s30 }
   0x8   :  { %s680_s11 = scalar_lea.hbm %s1094_s1, 512 }
   0x9   :  { %p681_p0 = scmp.ne.s32.totalorder %s1094_s1, %s680_s11  ;;  %p684_p1 = scmp.lt.u32.totalorder %s680_s11, %s1094_s1 }
   0xb   :  { %p686_p2 = pnand %p684_p1, %p681_p0 }
   0xd   :  { %689 = shalt.err (!%p686_p2)
}
   0xe   :  { %s690_s16 = scalar_lea.vmem %s38_s28, 512  ;;  %p695_p4 = scmp.lt.s32.totalorder %s38_s28, %s38_s28 }
   0xf   :  { %p691_p3 = scmp.ne.s32.totalorder %s38_s28, %s690_s16  ;;  %p696_p5 = scmp.lt.s32.totalorder %s690_s16, %s690_s16 }
  0x11   :  { %p697_p6 = por %p696_p5, %p695_p4 }
  0x13   :  { %p698_p7 = pnand %p697_p6, %p691_p3 }
  0x15   :  { %701 = shalt.err (!%p698_p7)
}
  0x16   :  { %s892_s17 = smov 128   ;;  %s893_s18 = smov 8  }
  0x17   :  { %43 = dma.hbm_to_vmem [thread:$0]  %s1094_s1, 512, %s38_s28, [#allocation7], %s892_s17, %s892_s17, %s893_s18  }
  0x18   :  { %s702_s23 = scalar_lea.hbm %s1096_s3, 2048 }
  0x19   :  { %p703_p8 = scmp.ne.s32.totalorder %s1096_s3, %s702_s23  ;;  %p706_p9 = scmp.lt.u32.totalorder %s702_s23, %s1096_s3 }
  0x1b   :  { %p708_p10 = pnand %p706_p9, %p703_p8 }
  0x1d   :  { %711 = shalt.err (!%p708_p10)
}
  0x1e   :  { %s712_s29 = scalar_lea.vmem %s946_s30, 2048  ;;  %p717_p12 = scmp.lt.s32.totalorder %s946_s30, %s946_s30 }
  0x1f   :  { %p713_p11 = scmp.ne.s32.totalorder %s946_s30, %s712_s29  ;;  %p718_p13 = scmp.lt.s32.totalorder %s712_s29, %s712_s29 }
  0x21   :  { %p719_p0 = por %p718_p13, %p717_p12 }
  0x23   :  { %p720_p1 = pnand %p719_p0, %p713_p11 }
  0x25   :  { %723 = shalt.err (!%p720_p1)
}
  0x26   :  { %65 = dma.hbm_to_vmem [thread:$0]  %s1096_s3, 2048, %s946_s30, [#allocation10], %s892_s17, %s892_s17, %s893_s18  }
  0x27   :  { %s894_s9 = smov [#allocation12]   ;;  %s895_s11 = smov [#allocation3]  }
  0x28   :  { %s81_s10 = sshll.u32 %s894_s9, 4  ;;  %s25_s12 = sshll.u32 %s895_s11, 4  ;;  %s82_s10 = int_to_ptr.vmem [resolvable:$true] %s81_s10  ;;  %s983_s12 = int_to_ptr.vmem [resolvable:$true] %s25_s12 }
  0x29   :  { %s724_s15 = scalar_lea.hbm %s1098_s5, 2048 }
  0x2a   :  { %p725_p2 = scmp.ne.s32.totalorder %s1098_s5, %s724_s15  ;;  %p728_p3 = scmp.lt.u32.totalorder %s724_s15, %s1098_s5 }
  0x2c   :  { %p730_p4 = pnand %p728_p3, %p725_p2 }
  0x2e   :  { %733 = shalt.err (!%p730_p4)
}
  0x2f   :  { %s734_s3 = scalar_lea.vmem %s82_s10, 2048  ;;  %p739_p6 = scmp.lt.s32.totalorder %s82_s10, %s82_s10 }
  0x30   :  { %p735_p5 = scmp.ne.s32.totalorder %s82_s10, %s734_s3  ;;  %p740_p7 = scmp.lt.s32.totalorder %s734_s3, %s734_s3 }
  0x32   :  { %p741_p8 = por %p740_p7, %p739_p6 }
  0x34   :  { %p742_p9 = pnand %p741_p8, %p735_p5 }
  0x36   :  { %745 = shalt.err (!%p742_p9)
}
  0x37   :  { %87 = dma.hbm_to_vmem [thread:$0]  %s1098_s5, 2048, %s82_s10, [#allocation13], %s892_s17, %s892_s17, %s893_s18  }
  0x38   :  { %s746_s25 = scalar_lea.hbm %s1093_s0, 128 }
  0x39   :  { %p747_p10 = scmp.ne.s32.totalorder %s1093_s0, %s746_s25  ;;  %p750_p11 = scmp.lt.u32.totalorder %s746_s25, %s1093_s0 }
  0x3b   :  { %p752_p12 = pnand %p750_p11, %p747_p10 }
  0x3d   :  { %755 = shalt.err (!%p752_p12)
}
  0x3e   :  { %s756_s28 = scalar_lea.vmem %s983_s12, 128  ;;  %s760_s5 = scalar_lea.vmem %s983_s12, 256 }
  0x3f   :  { %p757_p13 = scmp.ne.s32.totalorder %s983_s12, %s756_s28  ;;  %p761_p0 = scmp.lt.s32.totalorder %s983_s12, %s983_s12 }
  0x40   :  { %p762_p1 = scmp.lt.s32.totalorder %s760_s5, %s756_s28 }
  0x42   :  { %p763_p2 = por %p762_p1, %p761_p0 }
  0x44   :  { %p764_p3 = pnand %p763_p2, %p757_p13 }
  0x46   :  { %767 = shalt.err (!%p764_p3)
}
  0x47   :  { %31 = dma.hbm_to_vmem [thread:$0]  %s1093_s0, 128, %s983_s12, [#allocation4], %s892_s17, %s892_s17, %s893_s18  }
  0x48   :  { %s896_s11 = smov [#allocation8]   ;;  %s897_s14 = smov [#allocation11]  }
  0x49   :  { %s50_s13 = sshll.u32 %s896_s11, 4  ;;  %s72_s15 = sshll.u32 %s897_s14, 4  ;;  %s51_s13 = int_to_ptr.vmem [resolvable:$true] %s50_s13  ;;  %s73_s15 = int_to_ptr.vmem [resolvable:$true] %s72_s15 }
  0x4a   :  { %s768_s20 = scalar_lea.hbm %s1095_s2, 16 }
  0x4b   :  { %p769_p4 = scmp.ne.s32.totalorder %s1095_s2, %s768_s20  ;;  %p772_p5 = scmp.lt.u32.totalorder %s768_s20, %s1095_s2 }
  0x4d   :  { %p774_p6 = pnand %p772_p5, %p769_p4 }
  0x4f   :  { %777 = shalt.err (!%p774_p6)
}
  0x50   :  { %s778_s0 = scalar_lea.vmem %s51_s13, 16  ;;  %s782_s12 = scalar_lea.vmem %s51_s13, 32 }
  0x51   :  { %p779_p7 = scmp.ne.s32.totalorder %s51_s13, %s778_s0  ;;  %p783_p8 = scmp.lt.s32.totalorder %s51_s13, %s51_s13 }
  0x52   :  { %p784_p9 = scmp.lt.s32.totalorder %s782_s12, %s778_s0 }
  0x54   :  { %p785_p10 = por %p784_p9, %p783_p8 }
  0x56   :  { %p786_p11 = pnand %p785_p10, %p779_p7 }
  0x58   :  { %789 = shalt.err (!%p786_p11)
}
  0x59   :  { %53 = dma.hbm_to_vmem [thread:$0]  %s1095_s2, 16, %s51_s13, [#allocation7]  }
  0x5a   :  { %s790_s27 = scalar_lea.hbm %s1097_s4, 16 }
  0x5b   :  { %p791_p12 = scmp.ne.s32.totalorder %s1097_s4, %s790_s27  ;;  %p794_p13 = scmp.lt.u32.totalorder %s790_s27, %s1097_s4 }
  0x5d   :  { %p796_p0 = pnand %p794_p13, %p791_p12 }
  0x5f   :  { %799 = shalt.err (!%p796_p0)
}
  0x60   :  { %s800_s9 = scalar_lea.vmem %s73_s15, 16  ;;  %s804_s10 = scalar_lea.vmem %s73_s15, 32 }
  0x61   :  { %p801_p1 = scmp.ne.s32.totalorder %s73_s15, %s800_s9  ;;  %p805_p2 = scmp.lt.s32.totalorder %s73_s15, %s73_s15 }
  0x62   :  { %p806_p3 = scmp.lt.s32.totalorder %s804_s10, %s800_s9 }
  0x64   :  { %p807_p4 = por %p806_p3, %p805_p2 }
  0x66   :  { %p808_p5 = pnand %p807_p4, %p801_p1 }
  0x68   :  { %811 = shalt.err (!%p808_p5)
}
  0x69   :  { %75 = dma.hbm_to_vmem [thread:$0]  %s1097_s4, 16, %s73_s15, [#allocation10]  }
  0x6a   :  { %s898_s13 = smov [#allocation14]   ;;  %s812_s20 = scalar_lea.hbm %s1099_s6, 16 }
  0x6b   :  { %s94_s14 = sshll.u32 %s898_s13, 4  ;;  %p813_p6 = scmp.ne.s32.totalorder %s1099_s6, %s812_s20  ;;  %s95_s14 = int_to_ptr.vmem [resolvable:$true] %s94_s14 }
  0x6c   :  { %p816_p7 = scmp.lt.u32.totalorder %s812_s20, %s1099_s6 }
  0x6e   :  { %p818_p8 = pnand %p816_p7, %p813_p6 }
  0x70   :  { %821 = shalt.err (!%p818_p8)
}
  0x71   :  { %s822_s0 = scalar_lea.vmem %s95_s14, 16  ;;  %s826_s4 = scalar_lea.vmem %s95_s14, 32 }
  0x72   :  { %p823_p9 = scmp.ne.s32.totalorder %s95_s14, %s822_s0  ;;  %p827_p10 = scmp.lt.s32.totalorder %s95_s14, %s95_s14 }
  0x73   :  { %p828_p11 = scmp.lt.s32.totalorder %s826_s4, %s822_s0 }
  0x75   :  { %p829_p12 = por %p828_p11, %p827_p10 }
  0x77   :  { %p830_p13 = pnand %p829_p12, %p823_p9 }
  0x79   :  { %833 = shalt.err (!%p830_p13)
}
  0x7a   :  { %97 = dma.hbm_to_vmem [thread:$0]  %s1099_s6, 16, %s95_s14, [#allocation13]  }
  0x7b   :  { %878 = dma.done.wait [#allocation4], 256  }
  0x7c   :  { %879 = vsyncadd [#allocation4], 4294967040 }
  0x7d   :  { %880 = dma.done.wait [#allocation7], 528  }
  0x7e   :  { %881 = vsyncadd [#allocation7], 4294966768 }
  0x7f   :  { %882 = dma.done.wait [#allocation10], 2064  }
  0x80   :  { %883 = vsyncadd [#allocation10], 4294965232 }
  0x81   :  { %884 = dma.done.wait [#allocation13], 2064  }
  0x82   :  { %885 = vsyncadd [#allocation13], 4294965232  ;;  %vm136_vm0 = vcmask 261120   ;;  %v125_v0 = vld [vmem:[#allocation6] sm:$0xff]  ;;  %v126_v1 = vld [vmem:[#allocation6 + $0x8] sm:$0xff]  ;;  %vm420_vm1 = vcmask 523264  }
  0x83   :  { %v127_v2 = vld [vmem:[#allocation6 + $0x10] sm:$0xff]  ;;  %v593_v3 = vpack.c.bf16 %v126_v1, %v125_v0  ;;  %v128_v4 = vld [vmem:[#allocation6 + $0x18] sm:$0xff]  ;;  %v224_v7 = vld [vmem:[#allocation9] sm:$0xff] }
  0x84   :  { %v123_v5 = vld [vmem:[#allocation3] sm:$0xff]  ;;  %v597_v6 = vpack.c.bf16 %v128_v4, %v127_v2  ;;  %v322_v9 = vld [vmem:[#allocation12] sm:$0xff]  ;;  %v227_v13 = vld [vmem:[#allocation9 + $0x18] sm:$0xff] }
  0x85   :  { %520 = vmatprep.mubr.msk.f32.mxu0 %vm136_vm0, %v123_v5  ;;  %v225_v8 = vld [vmem:[#allocation9 + $0x8] sm:$0xff]  ;;  %594 = vmatprep.subr.bf16.mxu0 %v593_v3  ;;  %v226_v12 = vld [vmem:[#allocation9 + $0x10] sm:$0xff]  ;;  %v228_v15 = vld [vmem:[#allocation9 + $0x20] sm:$0xff] }
  0x86   :  { %v601_v10 = vpack.c.bf16 %v225_v8, %v224_v7  ;;  %v323_v11 = vld [vmem:[#allocation12 + $0x8] sm:$0xff]  ;;  %596 = vmatpush3.bf16.msra.mxu0 %v593_v3  ;;  %v605_v14 = vpack.c.bf16 %v227_v13, %v226_v12  ;;  %v324_v18 = vld [vmem:[#allocation12 + $0x10] sm:$0xff]  ;;  %v325_v19 = vld [vmem:[#allocation12 + $0x18] sm:$0xff] }
  0x87   :  { %598 = vmatprep.subr.bf16.mxu0 %v597_v6  ;;  %v633_v16 = vpack.c.bf16 %v323_v11, %v322_v9  ;;  %v229_v17 = vld [vmem:[#allocation9 + $0x28] sm:$0xff]  ;;  %v124_v21 = vld [vmem:[#allocation3 + $0x8] sm:$0xff]  ;;  %v637_v24 = vpack.c.bf16 %v325_v19, %v324_v18  ;;  %v232_v28 = vld [vmem:[#allocation9 + $0x40] sm:$0xff] }
  0x88   :  { %602 = vmatprep.subr.bf16.mxu1 %v601_v10  ;;  %v609_v20 = vpack.c.bf16 %v229_v17, %v228_v15  ;;  %v230_v22 = vld [vmem:[#allocation9 + $0x30] sm:$0xff]  ;;  %v231_v23 = vld [vmem:[#allocation9 + $0x38] sm:$0xff]  ;;  %v326_v25 = vld [vmem:[#allocation12 + $0x20] sm:$0xff] }
  0x89   :  { %604 = vmatpush3.bf16.msra.mxu1 %v601_v10  ;;  %v327_v26 = vld [vmem:[#allocation12 + $0x28] sm:$0xff]  ;;  %v613_v27 = vpack.c.bf16 %v231_v23, %v230_v22  ;;  %v328_v31 = vld [vmem:[#allocation12 + $0x30] sm:$0xff]  ;;  %v329_v32 = vld [vmem:[#allocation12 + $0x38] sm:$0xff] }
  0x8a   :  { %606 = vmatprep.subr.bf16.mxu1 %v605_v14  ;;  %600 = vmatpush3.bf16.msra.mxu0 %v597_v6  ;;  %v233_v29 = vld [vmem:[#allocation9 + $0x48] sm:$0xff]  ;;  %v641_v30 = vpack.c.bf16 %v327_v26, %v326_v25  ;;  %v234_v34 = vld [vmem:[#allocation9 + $0x50] sm:$0xff]  ;;  %v235_v35 = vld [vmem:[#allocation9 + $0x58] sm:$0xff]  ;;  %v645_v36 = vpack.c.bf16 %v329_v32, %v328_v31 }
  0x8b   :  { %634 = vmatprep.subr.bf16.mxu0 %v633_v16  ;;  %v617_v33 = vpack.c.bf16 %v233_v29, %v232_v28  ;;  %v330_v37 = vld [vmem:[#allocation12 + $0x40] sm:$0xff]  ;;  %v331_v38 = vld [vmem:[#allocation12 + $0x48] sm:$0xff]  ;;  %v621_v39 = vpack.c.bf16 %v235_v35, %v234_v34  ;;  %v332_v43 = vld [vmem:[#allocation12 + $0x50] sm:$0xff] }
  0x8c   :  { %v236_v40 = vld [vmem:[#allocation9 + $0x60] sm:$0xff]  ;;  %v237_v41 = vld [vmem:[#allocation9 + $0x68] sm:$0xff]  ;;  %v649_v42 = vpack.c.bf16 %v331_v38, %v330_v37  ;;  %v238_v50 = vld [vmem:[#allocation9 + $0x70] sm:$0xff] }
  0x8d   :  { %608 = vmatpush3.bf16.msra.mxu1 %v605_v14  ;;  %521 = vmatmul.mubr.msk.f32.vlgmr.msra.gmra.mrb[0].mxu0 %vm136_vm0, %v124_v21  ;;  %v333_v44 = vld [vmem:[#allocation12 + $0x58] sm:$0xff]  ;;  %v625_v45 = vpack.c.bf16 %v237_v41, %v236_v40  ;;  %v334_v47 = vld [vmem:[#allocation12 + $0x60] sm:$0xff]  ;;  %v335_v48 = vld [vmem:[#allocation12 + $0x68] sm:$0xff] }
  0x8e   :  { %610 = vmatprep.subr.bf16.mxu1 %v609_v20  ;;  %636 = vmatpush3.bf16.msra.mxu0 %v633_v16  ;;  %v653_v46 = vpack.c.bf16 %v333_v44, %v332_v43  ;;  %v657_v49 = vpack.c.bf16 %v335_v48, %v334_v47  ;;  %v239_v51 = vld [vmem:[#allocation9 + $0x78] sm:$0xff]  ;;  %v468_v63 = vld [vmem:[#allocation11] ss:$0 sm:$0xff]  ;;  %v469_v0 = vld [vmem:[#allocation14] ss:$0 sm:$0xff] }
  0x8f   :  { %638 = vmatprep.subr.bf16.mxu0 %v637_v24  ;;  %v629_v52 = vpack.c.bf16 %v239_v51, %v238_v50  ;;  %v336_v53 = vld [vmem:[#allocation12 + $0x70] sm:$0xff]  ;;  %v337_v54 = vld [vmem:[#allocation12 + $0x78] sm:$0xff] }
  0x90   :  { %v661_v55 = vpack.c.bf16 %v337_v54, %v336_v53  ;;  %v465_v56 = vld [vmem:[#allocation8] ss:$0 sm:$0xff] }
  0x91   :  { %612 = vmatpush3.bf16.msra.mxu1 %v609_v20 }
  0x92   :  { %614 = vmatprep.subr.bf16.mxu1 %v613_v27  ;;  %640 = vmatpush3.bf16.msra.mxu0 %v637_v24 }
  0x93   :  { %642 = vmatprep.subr.bf16.mxu0 %v641_v30 }
  0x95   :  { %616 = vmatpush3.bf16.msra.mxu1 %v613_v27 }
  0x96   :  { %618 = vmatprep.subr.bf16.mxu1 %v617_v33  ;;  %644 = vmatpush3.bf16.msra.mxu0 %v641_v30 }
  0x97   :  { %646 = vmatprep.subr.bf16.mxu0 %v645_v36 }
  0x99   :  { %620 = vmatpush3.bf16.msra.mxu1 %v617_v33 }
  0x9a   :  { %622 = vmatprep.subr.bf16.mxu1 %v621_v39  ;;  %648 = vmatpush3.bf16.msra.mxu0 %v645_v36 }
  0x9b   :  { %650 = vmatprep.subr.bf16.mxu0 %v649_v42 }
  0x9d   :  { %624 = vmatpush3.bf16.msra.mxu1 %v621_v39 }
  0x9e   :  { %626 = vmatprep.subr.bf16.mxu1 %v625_v45  ;;  %652 = vmatpush3.bf16.msra.mxu0 %v649_v42 }
  0x9f   :  { %654 = vmatprep.subr.bf16.mxu0 %v653_v46 }
  0xa1   :  { %628 = vmatpush3.bf16.msra.mxu1 %v625_v45 }
  0xa2   :  { %656 = vmatpush3.bf16.msra.mxu0 %v653_v46  ;;  %630 = vmatprep.subr.bf16.mxu1 %v629_v52 }
  0xa3   :  { %658 = vmatprep.subr.bf16.mxu0 %v657_v49 }
  0xa5   :  { %632 = vmatpush3.bf16.msra.mxu1 %v629_v52 }
  0xa6   :  { %660 = vmatpush3.bf16.msra.mxu0 %v657_v49 }
  0xa7   :  { %662 = vmatprep.subr.bf16.mxu0 %v661_v55 }
  0xaa   :  { %664 = vmatpush3.bf16.msra.mxu0 %v661_v55 }
 0x160   :  { %v522_v57 = vpop.f32.mrb[0].mxu0 }
 0x161   :  { %v215_v58 = vadd.f32 %v522_v57, %v465_v56  ;;  %v209_v59 = vpop.f32.mrb[1].mxu0 }
 0x162   :  { %v210_v60 = vadd.f32 %v465_v56, %v209_v59 }
 0x163   :  { %v219_v62 = vmax.f32 %v215_v58, 0.0 }
 0x164   :  { %v218_v61 = vmax.f32 %v210_v60, 0.0 }
 0x166   :  { %555 = vmatprep.mubr.f32.mxu1 %v218_v61  ;;  %590 = vmatprep.mubr.f32.mxu0 %v218_v61 }
 0x167   :  { %556 = vmatmul.mubr.f32.vlgmr.msra.gmra.mrb[0].mxu1 %v219_v62  ;;  %591 = vmatmul.mubr.f32.vlgmr.msra.gmra.mrb[2].mxu0 %v219_v62 }
 0x23a   :  { %v557_v1 = vpop.f32.mrb[0].mxu1  ;;  %v592_v2 = vpop.f32.mrb[2].mxu0 }
 0x23b   :  { %v319_v3 = vadd.f32 %v557_v1, %v468_v63  ;;  %v417_v4 = vadd.f32 %v592_v2, %v469_v0  ;;  %v313_v5 = vpop.f32.mrb[1].mxu1  ;;  %v411_v6 = vpop.f32.mrb[3].mxu0 }
 0x23c   :  { %v314_v7 = vadd.f32 %v468_v63, %v313_v5  ;;  %v412_v8 = vadd.f32 %v469_v0, %v411_v6 }
 0x23d   :  { %422 = vst.msk [vmem:[#allocation15 + $0x8] sm:$0xff] %vm420_vm1, %v319_v3  ;;  %v425_v9 = vmul.f32 1.442695, %v417_v4 }
 0x23e   :  { %421 = vst.msk [vmem:[#allocation15] sm:$0xff] %vm420_vm1, %v314_v7  ;;  %v423_v10 = vmul.f32 1.442695, %v412_v8 }
 0x23f   :  { %676 = vpow2.f32 %v425_v9 }
 0x240   :  { %678 = vpow2.f32 %v423_v10 }
 0x249   :  { %v677_v11 = vpop.eup %676 }
 0x24a   :  { %v679_v12 = vpop.eup %678  ;;  %428 = vst.msk [vmem:[#allocation16 + $0x8] sm:$0xff] %vm420_vm1, %v677_v11 }
 0x24b   :  { %427 = vst.msk [vmem:[#allocation16] sm:$0xff] %vm420_vm1, %v679_v12 }
 0x24c   :  { %433 = vsyncadd [#allocation5], 128  ;;  %s899_s6 = smov [#allocation15]  }
 0x24d   :  { %s434_s23 = sshll.u32 %s899_s6, 4  ;;  %s435_s23 = int_to_ptr.vmem [resolvable:$true] %s434_s23 }
 0x24e   :  { %s834_s24 = scalar_lea.vmem %s435_s23, 128  ;;  %s838_s25 = scalar_lea.vmem %s435_s23, 256 }
 0x24f   :  { %p835_p0 = scmp.ne.s32.totalorder %s435_s23, %s834_s24  ;;  %p839_p1 = scmp.lt.s32.totalorder %s435_s23, %s435_s23 }
 0x250   :  { %p840_p2 = scmp.lt.s32.totalorder %s838_s25, %s834_s24 }
 0x252   :  { %p841_p3 = por %p840_p2, %p839_p1 }
 0x254   :  { %p842_p4 = pnand %p841_p3, %p835_p0 }
 0x256   :  { %845 = shalt.err (!%p842_p4)
}
 0x257   :  { %s846_s29 = scalar_lea.hbm %s1100_s7, 128 }
 0x258   :  { %p847_p5 = scmp.ne.s32.totalorder %s1100_s7, %s846_s29  ;;  %p850_p6 = scmp.lt.u32.totalorder %s846_s29, %s1100_s7 }
 0x25a   :  { %p852_p7 = pnand %p850_p6, %p847_p5 }
 0x25c   :  { %855 = shalt.err (!%p852_p7)
}
 0x25d   :  { %440 = dma.vmem_to_hbm [thread:$0]  %s435_s23, 128, %s1100_s7, [#allocation5], %s892_s17, %s892_s17, %s893_s18  }
 0x25e   :  { %445 = vsyncadd [#allocation17], 128  ;;  %s900_s11 = smov [#allocation16]  }
 0x25f   :  { %s446_s13 = sshll.u32 %s900_s11, 4  ;;  %s447_s13 = int_to_ptr.vmem [resolvable:$true] %s446_s13 }
 0x260   :  { %s856_s14 = scalar_lea.vmem %s447_s13, 128  ;;  %s860_s16 = scalar_lea.vmem %s447_s13, 256 }
 0x261   :  { %p857_p8 = scmp.ne.s32.totalorder %s447_s13, %s856_s14  ;;  %p861_p9 = scmp.lt.s32.totalorder %s447_s13, %s447_s13 }
 0x262   :  { %p862_p10 = scmp.lt.s32.totalorder %s860_s16, %s856_s14 }
 0x264   :  { %p863_p11 = por %p862_p10, %p861_p9 }
 0x266   :  { %p864_p12 = pnand %p863_p11, %p857_p8 }
 0x268   :  { %867 = shalt.err (!%p864_p12)
}
 0x269   :  { %s868_s21 = scalar_lea.hbm %s1101_s8, 128 }
 0x26a   :  { %p869_p13 = scmp.ne.s32.totalorder %s1101_s8, %s868_s21  ;;  %p872_p0 = scmp.lt.u32.totalorder %s868_s21, %s1101_s8 }
 0x26c   :  { %p874_p1 = pnand %p872_p0, %p869_p13 }
 0x26e   :  { %877 = shalt.err (!%p874_p1)
}
 0x26f   :  { %452 = dma.vmem_to_hbm [thread:$0]  %s447_s13, 128, %s1101_s8, [#allocation17], %s892_s17, %s892_s17, %s893_s18  }
 0x270   :  { %886 = dma.done.wait [#allocation5], 256  }
 0x271   :  { %887 = vsyncadd [#allocation5], 4294967040 }
 0x272   :  { %888 = dma.done.wait [#allocation17], 256  }
 0x273   :  { %889 = vsyncadd [#allocation17], 4294967040 }
 0x274   :  { %459 = vsyncpa [#allocation4], 1 }
 0x275   :  { %460 = vsyncpa [#allocation7], 1 }
 0x276   :  { %461 = vsyncpa [#allocation10], 1 }
 0x277   :  { %462 = vsyncpa [#allocation13], 1 }
 0x278   :  { %463 = vsyncpa [#allocation5], 1 }
 0x279   :  { %464 = vsyncpa [#allocation17], 1 }

</bundles_post_ra>
